<compile_context>
chip_gen: v7x
topology: tpu7x:2x2x1
jax: 0.10.0
libtpu: 0.0.40
codegen_flags: <defaults>
</compile_context>

<pallas_src>
import jax
import jax.numpy as jnp
from jax.experimental import pallas as pl
from jax.experimental.pallas import tpu as pltpu

LANE = 128
SUBLANE = 8


def _round_up(x, m):
    return ((x + m - 1) // m) * m


def dqn_kernel(x_ref, w1_ref, b1_ref, w2_ref, b2_ref, o_ref):
    # State arrives f32 (single HBM read); cast to bf16 in-kernel for the MXU.
    x = x_ref[...].astype(jnp.bfloat16)
    # layer1: x @ W1 (bf16 operands, f32 accumulation) + b1, ReLU (VPU epilogue)
    h = jnp.dot(x, w1_ref[...], preferred_element_type=jnp.float32)
    h = jnp.maximum(h + b1_ref[...], 0.0)
    # layer2: h @ W2 (+ b2); f32 accumulation, lane-dense f32 output slab
    q = jnp.dot(h.astype(jnp.bfloat16), w2_ref[...],
                preferred_element_type=jnp.float32)
    o_ref[...] = q + b2_ref[...]


def make_dqn_forward(w1, b1, w2, b2, *, block_m=1024):
    """One-time weight prep + returns a forward(state) closure.

    w1: [n_inputs, H]  b1: [1, H] (or [H])
    w2: [H, n_actions] b2: [1, n_actions] (or [n_actions])
    forward(state): [B, n_inputs] f32 -> [B, n_actions] f32
                    == relu(state @ w1 + b1) @ w2 + b2
    """
    n_in, H = w1.shape
    n_actions = w2.shape[1]
    H_pad = _round_up(H, LANE)
    A_pad = _round_up(n_actions, LANE)

    b1 = jnp.asarray(b1, jnp.float32).reshape(1, H)
    b2 = jnp.asarray(b2, jnp.float32).reshape(1, n_actions)

    # Padded / cast parameters built exactly once (zeros -> results unchanged).
    w1p = jnp.zeros((n_in, H_pad), jnp.bfloat16).at[:, :H].set(
        jnp.asarray(w1, jnp.float32).astype(jnp.bfloat16))
    b1p = jnp.zeros((1, H_pad), jnp.float32).at[:, :H].set(b1)
    w2p = jnp.zeros((H_pad, A_pad), jnp.bfloat16).at[:H, :n_actions].set(
        jnp.asarray(w2, jnp.float32).astype(jnp.bfloat16))
    b2p = jnp.zeros((1, A_pad), jnp.float32).at[:, :n_actions].set(b2)

    def forward(state):
        B = state.shape[0]

        # Pick the batch tile:
        #  - huge batches: block_m rows/step,
        #  - otherwise split into two parallel tiles (v7x: one per TensorCore),
        #    sublane-aligned, never padding tiny batches beyond one 8-row tile.
        if B >= 2 * block_m:
            tm = block_m
        else:
            tm = min(block_m, max(SUBLANE, _round_up(-(-B // 2), SUBLANE)))
        B_pad = _round_up(B, tm)

        x = jnp.asarray(state, jnp.float32)
        if B_pad != B:  # only materialize a padded copy when strictly needed
            x = jnp.pad(x, ((0, B_pad - B), (0, 0)))

        grid = (B_pad // tm,)

        out = pl.pallas_call(
            dqn_kernel,
            out_shape=jax.ShapeDtypeStruct((B_pad, A_pad), jnp.float32),
            grid=grid,
            in_specs=[
                # Streaming f32 batch tiles of the state.
                pl.BlockSpec((tm, n_in), lambda i: (i, 0)),
                # Weights/biases: constant index -> DMA'd once, resident.
                pl.BlockSpec((n_in, H_pad), lambda i: (0, 0)),
                pl.BlockSpec((1, H_pad), lambda i: (0, 0)),
                pl.BlockSpec((H_pad, A_pad), lambda i: (0, 0)),
                pl.BlockSpec((1, A_pad), lambda i: (0, 0)),
            ],
            out_specs=pl.BlockSpec((tm, A_pad), lambda i: (i, 0)),
            compiler_params=pltpu.CompilerParams(
                dimension_semantics=("parallel",)),
        )(x, w1p, b1p, w2p, b2p)

        # Strip batch/action padding (padded rows hold relu(b1)@W2+b2 garbage;
        # they are never observed).
        return out[:B, :n_actions]

    return forward


def init_dqn_params(key, n_inputs, n_actions, hidden_size):
    """nn.Linear-style init (U(-1/sqrt(fan_in), +)), stored as [in, out]."""
    k1, k2, k3, k4 = jax.random.split(key, 4)
    bound1 = 1.0 / jnp.sqrt(jnp.float32(n_inputs))
    bound2 = 1.0 / jnp.sqrt(jnp.float32(hidden_size))
    w1 = jax.random.uniform(k1, (n_inputs, hidden_size), jnp.float32, -bound1, bound1)
    b1 = jax.random.uniform(k2, (1, hidden_size), jnp.float32, -bound1, bound1)
    w2 = jax.random.uniform(k3, (hidden_size, n_actions), jnp.float32, -bound2, bound2)
    b2 = jax.random.uniform(k4, (1, n_actions), jnp.float32, -bound2, bound2)
    return w1, b1, w2, b2


if __name__ == "__main__":
    n_inputs, n_actions, hidden_size = 16, 4, 32

    key = jax.random.PRNGKey(0)
    k_params, k_big, k_small, k_odd = jax.random.split(key, 4)
    w1, b1, w2, b2 = init_dqn_params(k_params, n_inputs, n_actions, hidden_size)

    # Build once: weight padding/casting happens here, not per forward call.
    dqn_forward = make_dqn_forward(w1, b1, w2, b2, block_m=1024)

    def f32_ref(x):
        return jnp.maximum(x @ w1 + b1, 0.0) @ w2 + b2

    # Large replay batch: tm=256, grid=2 (parallel -> both v7x TCs busy).
    big = jax.random.normal(k_big, (512, n_inputs), jnp.float32)
    out_big = jax.block_until_ready(dqn_forward(big))
    assert out_big.shape == (512, n_actions)
    assert jnp.allclose(out_big, f32_ref(big), atol=5e-2, rtol=5e-2)

    # Small inference batch: single 8-row tile, no padding copy.
    small = jax.random.normal(k_small, (8, n_inputs), jnp.float32)
    out_small = jax.block_until_ready(dqn_forward(small))
    assert out_small.shape == (8, n_actions)
    assert jnp.allclose(out_small, f32_ref(small), atol=5e-2, rtol=5e-2)

    # Non-multiple batch: exercises the pad-only-when-needed path (tm=8, grid=2).
    odd = jax.random.normal(k_odd, (12, n_inputs), jnp.float32)
    out_odd = jax.block_until_ready(dqn_forward(odd))
    assert out_odd.shape == (12, n_actions)
    assert jnp.allclose(out_odd, f32_ref(odd), atol=5e-2, rtol=5e-2)

    print("KERNEL_OK")
</pallas_src>

<mosaic_0001>
module attributes {stable_mosaic.version = 11 : i64} {
  func.func @dqn_kernel(%arg0: i32, %arg1: memref<256x16xf32, #tpu.memory_space<vmem>>, %arg2: memref<16x128xbf16, #tpu.memory_space<vmem>>, %arg3: memref<1x128xf32, #tpu.memory_space<vmem>>, %arg4: memref<128x128xbf16, #tpu.memory_space<vmem>>, %arg5: memref<1x128xf32, #tpu.memory_space<vmem>>, %arg6: memref<256x128xf32, #tpu.memory_space<vmem>>) attributes {dimension_semantics = [#tpu.dimension_semantics<parallel>], iteration_bounds = array<i64: 2>, scalar_prefetch = 0 : i64, scratch_operands = 0 : i64, tpu.core_type = #tpu.core_type<tc>, window_params = [{transform_indices = @transform_0, window_bounds = array<i64: 256, 16>}, {pipeline_mode = #tpu.pipeline_mode<synchronous>, transform_indices = @transform_1, window_bounds = array<i64: 16, 128>}, {pipeline_mode = #tpu.pipeline_mode<synchronous>, transform_indices = @transform_2, window_bounds = array<i64: 1, 128>}, {pipeline_mode = #tpu.pipeline_mode<synchronous>, transform_indices = @transform_3, window_bounds = array<i64: 128, 128>}, {pipeline_mode = #tpu.pipeline_mode<synchronous>, transform_indices = @transform_4, window_bounds = array<i64: 1, 128>}, {transform_indices = @transform_5, window_bounds = array<i64: 256, 128>}]} {
    %c0 = arith.constant 0 : index
    %c0_0 = arith.constant 0 : index
    %0 = vector.load %arg1[%c0, %c0_0] : memref<256x16xf32, #tpu.memory_space<vmem>>, vector<256x16xf32>
    %1 = arith.truncf %0 : vector<256x16xf32> to vector<256x16xbf16>
    %c0_1 = arith.constant 0 : index
    %c0_2 = arith.constant 0 : index
    %2 = vector.load %arg2[%c0_1, %c0_2] : memref<16x128xbf16, #tpu.memory_space<vmem>>, vector<16x128xbf16>
    %cst = arith.constant dense<0.000000e+00> : vector<256x128xf32>
    %3 = tpu.matmul %1, %2, %cst {dimension_numbers = #tpu.dot_dimension_numbers<[1], [0], [0], [1], [0, 0, 1, 1], [], []>} : vector<256x16xbf16>, vector<16x128xbf16>, vector<256x128xf32> -> vector<256x128xf32>
    %c0_3 = arith.constant 0 : index
    %c0_4 = arith.constant 0 : index
    %4 = vector.load %arg3[%c0_3, %c0_4] : memref<1x128xf32, #tpu.memory_space<vmem>>, vector<1x128xf32>
    %5 = vector.broadcast %4 : vector<1x128xf32> to vector<256x128xf32>
    %6 = arith.addf %3, %5 : vector<256x128xf32>
    %cst_5 = arith.constant 0.000000e+00 : f32
    %7 = vector.broadcast %cst_5 : f32 to vector<256x128xf32>
    %8 = arith.maximumf %6, %7 : vector<256x128xf32>
    %9 = arith.truncf %8 : vector<256x128xf32> to vector<256x128xbf16>
    %c0_6 = arith.constant 0 : index
    %c0_7 = arith.constant 0 : index
    %10 = vector.load %arg4[%c0_6, %c0_7] : memref<128x128xbf16, #tpu.memory_space<vmem>>, vector<128x128xbf16>
    %cst_8 = arith.constant dense<0.000000e+00> : vector<256x128xf32>
    %11 = tpu.matmul %9, %10, %cst_8 {dimension_numbers = #tpu.dot_dimension_numbers<[1], [0], [0], [1], [0, 0, 1, 1], [], []>} : vector<256x128xbf16>, vector<128x128xbf16>, vector<256x128xf32> -> vector<256x128xf32>
    %c0_9 = arith.constant 0 : index
    %c0_10 = arith.constant 0 : index
    %12 = vector.load %arg5[%c0_9, %c0_10] : memref<1x128xf32, #tpu.memory_space<vmem>>, vector<1x128xf32>
    %13 = vector.broadcast %12 : vector<1x128xf32> to vector<256x128xf32>
    %14 = arith.addf %11, %13 : vector<256x128xf32>
    %c0_11 = arith.constant 0 : index
    %c0_12 = arith.constant 0 : index
    %15 = vector.load %arg6[%c0_11, %c0_12] : memref<256x128xf32, #tpu.memory_space<vmem>>, vector<256x128xf32>
    tpu.vector_store %arg6[%c0_11, %c0_12], %14 {strides = array<i32>} : memref<256x128xf32, #tpu.memory_space<vmem>>, vector<256x128xf32>,
    return
  }
  func.func @transform_0(%arg0: i32) -> (i32, i32) {
    %c0_i32 = arith.constant 0 : i32
    %c0_i32_0 = arith.constant 0 : i32
    return %arg0, %c0_i32 : i32, i32
  }
  func.func @transform_1(%arg0: i32) -> (i32, i32) {
    %c0_i32 = arith.constant 0 : i32
    %c0_i32_0 = arith.constant 0 : i32
    %c0_i32_1 = arith.constant 0 : i32
    return %c0_i32, %c0_i32_0 : i32, i32
  }
  func.func @transform_2(%arg0: i32) -> (i32, i32) {
    %c0_i32 = arith.constant 0 : i32
    %c0_i32_0 = arith.constant 0 : i32
    %c0_i32_1 = arith.constant 0 : i32
    return %c0_i32, %c0_i32_0 : i32, i32
  }
  func.func @transform_3(%arg0: i32) -> (i32, i32) {
    %c0_i32 = arith.constant 0 : i32
    %c0_i32_0 = arith.constant 0 : i32
    %c0_i32_1 = arith.constant 0 : i32
    return %c0_i32, %c0_i32_0 : i32, i32
  }
  func.func @transform_4(%arg0: i32) -> (i32, i32) {
    %c0_i32 = arith.constant 0 : i32
    %c0_i32_0 = arith.constant 0 : i32
    %c0_i32_1 = arith.constant 0 : i32
    return %c0_i32, %c0_i32_0 : i32, i32
  }
  func.func @transform_5(%arg0: i32) -> (i32, i32) {
    %c0_i32 = arith.constant 0 : i32
    %c0_i32_0 = arith.constant 0 : i32
    return %arg0, %c0_i32 : i32, i32
  }
}

</mosaic_0001>

<bundles_post_ra>
// kernel: tpu_custom_call.1
= control target key start
LH: loop header
LB: loop body
LE: loop exit
PB: predicated region body
PF: predicated region fallthrough
CT: control target
= control target key end

     0   :  { %10 = vsyncpa [#allocation3], 0  ;;  %s1506_s0 = inlined_call_operand.vmem [shape: f32[512,16], index: 0, kind: input, shape index: {}]   ;;  %s1507_s1 = inlined_call_operand.vmem [shape: bf16[16,128], index: 1, kind: input, shape index: {}]   ;;  %s1508_s2 = inlined_call_operand.vmem [shape: f32[1,128], index: 2, kind: input, shape index: {}]   ;;  %s1509_s3 = inlined_call_operand.vmem [shape: bf16[128,128], index: 3, kind: input, shape index: {}]   ;;  %s1510_s4 = inlined_call_operand.vmem [shape: f32[1,128], index: 4, kind: input, shape index: {}]   ;;  %s1511_s5 = inlined_call_operand.hbm [shape: f32[512,128], index: 5, kind: output, shape index: {}]  }
   0x1   :  { %12 = vsyncpa [#allocation3 + $0x1], 0  ;;  %s1214_s18 = smov 0   ;;  %s1216_s19 = smov 0  }
   0x2   :  { %s1218_s20 = smov 0   ;;  %s1220_s21 = smov 0  }
   0x3 LB: > { %s1235_s22 = sadd.s32 4294967295, %s1179_s21   ;;  %s888_s23 = sadd.s32 4294967294, %s1179_s21   ;;  %s1179_s21 = sphi %s1220_s21, %s1517_s21   ;;  %s1175_s20 = sphi %s1218_s20, %s1516_s20   ;;  %s1171_s19 = sphi %s1216_s19, %s1515_s19   ;;  %s1167_s18 = sphi %s1214_s18, %s1514_s18  }
   0x4   : > { %s1239_s24 = sadd.s32 1, %s1179_s21   ;;  %s135_s25 = sadd.s32 1, %s1175_s20 }
   0x5   : > { %s132_s26 = ssub.s32 %s1179_s21, %s1239_s24  ;;  %p145_p0 = scmp.ne.s32.totalorder %s1175_s20, %s1171_s19 }
   0x6   : > { %p133_p1 = scmp.eq.s32.totalorder %s132_s26, 0  ;;  %p146_p2 = scmp.eq.s32.totalorder %s1235_s22, 1 }
   0x7   : > { %p151_p3 = scmp.ne.s32.totalorder %s1171_s19, %s1167_s18  ;;  %p152_p4 = scmp.eq.s32.totalorder %s888_s23, 1 }
   0x8   : > { %s1250_s27 = scalar_select %p133_p1, %s1175_s20, %s135_s25  }
   0x9   : > { %p1252_p5 = por %p146_p2, %p145_p0  ;;  %p1256_p6 = por %p152_p4, %p151_p3 }
   0xa   : > { %p891_p7 = scmp.ge.s32.totalorder %s1179_s21, 1  ;;  %p191_p8 = scmp.lt.s32.totalorder %s1179_s21, 3 }
   0xc   : > { %p192_p9 = pnand %p891_p7, %p191_p8 }
   0xd   : > { %v1108_v0 = vld [vmem:[%s1507_s1] sm:$0xff] (!%p192_p9)   ;;  %s893_s7 = sshll.u32 (!%p192_p9), %s1235_s22, 5  ;;  %v1110_v2 = vld [vmem:[%s1509_s3 + $0x8] sm:$0xff] (!%p192_p9)   ;;  %v1111_v3 = vld [vmem:[%s1509_s3 + $0x10] sm:$0xff] (!%p192_p9)   ;;  %vm290_vm0 = vcmask (!%p192_p9), 130048   ;;  %s216_s14 = sand.u32 (!%p192_p9), 1, %s1171_s19  }
   0xe   : > { %195 = sbr.rel (%p192_p9) target bundleno = 538 (0x21a), region = 40  ;;  %p220_p10 = scmp.lt.s32.totalorder (!%p192_p9), %s893_s7, 63  ;;  %969 = vmatprep.subr.bf16.mxu0 (!%p192_p9), %v1108_v0  ;;  %v1109_v1 = vld [vmem:[%s1509_s3] sm:$0xff] (!%p192_p9)   ;;  %v1112_v15 = vld [vmem:[%s1509_s3 + $0x18] sm:$0xff] (!%p192_p9)   ;;  %v1114_v23 = vld [vmem:[%s1509_s3 + $0x28] sm:$0xff] (!%p192_p9)  }
   0xf   : > { %970 = vmatpush3.bf16.msra.mxu0 (!%p192_p9), %v1108_v0  ;;  %1051 = vmatprep.subr.bf16.mxu1 (!%p192_p9), %v1109_v1  ;;  %v1113_v20 = vld [vmem:[%s1509_s3 + $0x20] sm:$0xff] (!%p192_p9)   ;;  %v1115_v55 = vld [vmem:[%s1509_s3 + $0x30] sm:$0xff] (!%p192_p9)   ;;  %v1116_v56 = vld [vmem:[%s1509_s3 + $0x38] sm:$0xff] (!%p192_p9)   ;;  %s927_s25 = sshll.u32 (!%p192_p9), %s1235_s22, 12  ;;  %s1465_s22 = scalar_lea.sflag (!%p192_p9), [#allocation3], %s216_s14 }
  0x10   : > { %1003 = vmatprep.subr.bf16.mxu0 (!%p192_p9), %v1109_v1  ;;  %1059 = vmatpush3.bf16.msra.mxu1 (!%p192_p9), %v1109_v1  ;;  %v1346_v57 = vld [vmem:[%s1508_s2] ss:$0 sm:$0xff] (!%p192_p9)  ;;  %s1181_s9 = smov (!%p192_p9), [#allocation2]  }
  0x11   : > { %1052 = vmatprep.subr.bf16.mxu1 (!%p192_p9), %v1110_v2  ;;  %s1121_s10 = sshll.u32 (!%p192_p9), %s1181_s9, 4  ;;  %s1122_s10 = int_to_ptr.vmem [resolvable:$false] %s1121_s10 }
  0x12   : > { %s1123_s11 = scalar_lea.vmem (!%p192_p9), %s1122_s10, 8192 }
  0x14   : > { %1060 = vmatpush3.bf16.msra.mxu1 (!%p192_p9), %v1110_v2 }
  0x15   : > { %s1519_s7 = smov (!%p220_p10, %s893_s7), 63  ;;  %1053 = vmatprep.subr.bf16.mxu1 %v1111_v3 }
  0x16   : > { %s894_s12 = sshll.u32 %s1519_s7, 3  ;;  %s1455_s7 = scalar_lea.hbm %s1511_s5, %s927_s25 }
  0x17   : > { %s1275_s15 = scalar_lea.vmem %s1506_s0, %s894_s12 }
  0x18   : > { %v227_v4 = vld [vmem:[%s1275_s15] sm:$0xff]  ;;  %v228_v5 = vld [vmem:[%s1275_s15 + $0x8] sm:$0xff]  ;;  %v229_v6 = vld [vmem:[%s1275_s15 + $0x10] sm:$0xff]  ;;  %1061 = vmatpush3.bf16.msra.mxu1 %v1111_v3 }
  0x19   : > { %v259_v7 = vpack.c.bf16 %v228_v5, %v227_v4  ;;  %v230_v8 = vld [vmem:[%s1275_s15 + $0x18] sm:$0xff]  ;;  %v231_v9 = vld [vmem:[%s1275_s15 + $0x20] sm:$0xff]  ;;  %v232_v10 = vld [vmem:[%s1275_s15 + $0x28] sm:$0xff]  ;;  %1054 = vmatprep.subr.bf16.mxu1 %v1112_v15 }
  0x1a   : > { %v260_v11 = vpack.c.bf16 %v230_v8, %v229_v6  ;;  %v261_v12 = vpack.c.bf16 %v232_v10, %v231_v9  ;;  %v233_v13 = vld [vmem:[%s1275_s15 + $0x30] sm:$0xff]  ;;  %v234_v14 = vld [vmem:[%s1275_s15 + $0x38] sm:$0xff]  ;;  %v235_v16 = vld [vmem:[%s1275_s15 + $0x40] sm:$0xff] }
  0x1b   : > { %971 = vmatprep.mubr.msk.bf16.mxu0 %vm290_vm0, %v259_v7  ;;  %v236_v17 = vld [vmem:[%s1275_s15 + $0x48] sm:$0xff]  ;;  %v262_v18 = vpack.c.bf16 %v234_v14, %v233_v13  ;;  %v237_v21 = vld [vmem:[%s1275_s15 + $0x50] sm:$0xff]  ;;  %v238_v22 = vld [vmem:[%s1275_s15 + $0x58] sm:$0xff] }
  0x1c   : > { %972 = vmatmul.mubr.msk.bf16.vlgmr.msra.gmra.mrb[0].mxu0 %vm290_vm0, %v260_v11  ;;  %v263_v19 = vpack.c.bf16 %v236_v17, %v235_v16  ;;  %1062 = vmatpush3.bf16.msra.mxu1 %v1112_v15  ;;  %v239_v24 = vld [vmem:[%s1275_s15 + $0x60] sm:$0xff]  ;;  %v240_v25 = vld [vmem:[%s1275_s15 + $0x68] sm:$0xff]  ;;  %v264_v26 = vpack.c.bf16 %v238_v22, %v237_v21  ;;  %v241_v28 = vld [vmem:[%s1275_s15 + $0x70] sm:$0xff] }
  0x1d   : > { %975 = vmatprep.mubr.msk.bf16.mxu0 %vm290_vm0, %v261_v12  ;;  %1004 = vmatpush3.bf16.msra.mxu0 %v1109_v1  ;;  %v265_v27 = vpack.c.bf16 %v240_v25, %v239_v24  ;;  %v242_v29 = vld [vmem:[%s1275_s15 + $0x78] sm:$0xff]  ;;  %v243_v30 = vld [vmem:[%s1275_s15 + $0x80] sm:$0xff]  ;;  %v244_v31 = vld [vmem:[%s1275_s15 + $0x88] sm:$0xff] }
  0x1e   : > { %1005 = vmatprep.subr.bf16.mxu0 %v1110_v2  ;;  %1055 = vmatprep.subr.bf16.mxu1 %v1113_v20  ;;  %v266_v32 = vpack.c.bf16 %v242_v29, %v241_v28  ;;  %v267_v33 = vpack.c.bf16 %v244_v31, %v243_v30  ;;  %v245_v34 = vld [vmem:[%s1275_s15 + $0x90] sm:$0xff]  ;;  %v246_v35 = vld [vmem:[%s1275_s15 + $0x98] sm:$0xff]  ;;  %v247_v36 = vld [vmem:[%s1275_s15 + $0xa0] sm:$0xff] }
  0x1f   : > { %v248_v37 = vld [vmem:[%s1275_s15 + $0xa8] sm:$0xff]  ;;  %v268_v38 = vpack.c.bf16 %v246_v35, %v245_v34  ;;  %v249_v40 = vld [vmem:[%s1275_s15 + $0xb0] sm:$0xff]  ;;  %v250_v41 = vld [vmem:[%s1275_s15 + $0xb8] sm:$0xff] }
  0x20   : > { %1063 = vmatpush3.bf16.msra.mxu1 %v1113_v20  ;;  %v269_v39 = vpack.c.bf16 %v248_v37, %v247_v36  ;;  %v251_v42 = vld [vmem:[%s1275_s15 + $0xc0] sm:$0xff]  ;;  %v252_v43 = vld [vmem:[%s1275_s15 + $0xc8] sm:$0xff]  ;;  %v270_v44 = vpack.c.bf16 %v250_v41, %v249_v40  ;;  %v253_v46 = vld [vmem:[%s1275_s15 + $0xd0] sm:$0xff] }
  0x21   : > { %1006 = vmatpush3.bf16.msra.mxu0 %v1110_v2  ;;  %1056 = vmatprep.subr.bf16.mxu1 %v1114_v23  ;;  %v271_v45 = vpack.c.bf16 %v252_v43, %v251_v42  ;;  %v254_v47 = vld [vmem:[%s1275_s15 + $0xd8] sm:$0xff]  ;;  %v255_v48 = vld [vmem:[%s1275_s15 + $0xe0] sm:$0xff]  ;;  %v256_v49 = vld [vmem:[%s1275_s15 + $0xe8] sm:$0xff] }
  0x22   : > { %1007 = vmatprep.subr.bf16.mxu0 %v1111_v3  ;;  %v272_v50 = vpack.c.bf16 %v254_v47, %v253_v46  ;;  %v273_v51 = vpack.c.bf16 %v256_v49, %v255_v48  ;;  %v257_v52 = vld [vmem:[%s1275_s15 + $0xf0] sm:$0xff]  ;;  %v258_v53 = vld [vmem:[%s1275_s15 + $0xf8] sm:$0xff]  ;;  %s892_s15 = sshll.u32 %s216_s14, 8 }
  0x23   : > { %v274_v54 = vpack.c.bf16 %v258_v53, %v257_v52  ;;  %s1390_s23 = scalar_lea.vmem [#allocation2], %s892_s15 }
  0x24   : > { %976 = vmatmul.mubr.msk.bf16.gmra.mrb[4].mxu0 %vm290_vm0, %v262_v18  ;;  %1064 = vmatpush3.bf16.msra.mxu1 %v1114_v23  ;;  %s826_s26 = sshll.u32 %s1390_s23, 4  ;;  %s1457_s26 = int_to_ptr.vmem [resolvable:$true] %s826_s26 }
  0x25   : > { %979 = vmatprep.mubr.msk.bf16.mxu0 %vm290_vm0, %v263_v19  ;;  %1008 = vmatpush3.bf16.msra.mxu0 %v1111_v3  ;;  %s1117_s8 = scalar_lea.vmem %s1457_s26, 4096  ;;  %p1124_p0 = scmp.lt.s32.totalorder %s1457_s26, %s1122_s10 }
  0x26   : > { %1009 = vmatprep.subr.bf16.mxu0 %v1112_v15  ;;  %1057 = vmatprep.subr.bf16.mxu1 %v1115_v55  ;;  %p1118_p11 = scmp.ne.s32.totalorder %s1457_s26, %s1117_s8  ;;  %p1125_p1 = scmp.lt.s32.totalorder %s1123_s11, %s1117_s8 }
  0x28   : > { %1065 = vmatpush3.bf16.msra.mxu1 %v1115_v55  ;;  %p1119_p12 = pnand %p1118_p11, %p1252_p5  ;;  %p1126_p2 = por %p1125_p1, %p1124_p0 }
  0x29   : > { %1010 = vmatpush3.bf16.msra.mxu0 %v1112_v15  ;;  %1058 = vmatprep.subr.bf16.mxu1 %v1116_v56 }
  0x2a   : > { %1011 = vmatprep.subr.bf16.mxu0 %v1113_v20  ;;  %p1120_p13 = pneg %p1119_p12 }
  0x2c   : > { %980 = vmatmul.mubr.msk.bf16.gmra.mrb[8].mxu0 %vm290_vm0, %v264_v26  ;;  %1066 = vmatpush3.bf16.msra.mxu1 %v1116_v56  ;;  %p1127_p3 = pnand %p1126_p2, %p1120_p13 }
  0x2d   : > { %983 = vmatprep.mubr.msk.bf16.mxu0 %vm290_vm0, %v265_v27  ;;  %1012 = vmatpush3.bf16.msra.mxu0 %v1113_v20 }
  0x2e   : > { %1013 = vmatprep.subr.bf16.mxu0 %v1114_v23 }
  0x31   : > { %1014 = vmatpush3.bf16.msra.mxu0 %v1114_v23 }
  0x32   : > { %1015 = vmatprep.subr.bf16.mxu0 %v1115_v55 }
  0x34   : > { %984 = vmatmul.mubr.msk.bf16.gmra.mrb[12].mxu0 %vm290_vm0, %v266_v32 }
  0x35   : > { %987 = vmatprep.mubr.msk.bf16.mxu0 %vm290_vm0, %v267_v33  ;;  %1016 = vmatpush3.bf16.msra.mxu0 %v1115_v55 }
  0x36   : > { %1017 = vmatprep.subr.bf16.mxu0 %v1116_v56 }
  0x39   : > { %1018 = vmatpush3.bf16.msra.mxu0 %v1116_v56 }
  0x3c   : > { %988 = vmatmul.mubr.msk.bf16.gmra.mrb[16].mxu0 %vm290_vm0, %v268_v38 }
  0x3d   : > { %991 = vmatprep.mubr.msk.bf16.mxu0 %vm290_vm0, %v269_v39 }
  0x44   : > { %992 = vmatmul.mubr.msk.bf16.gmra.mrb[20].mxu0 %vm290_vm0, %v270_v44 }
  0x45   : > { %995 = vmatprep.mubr.msk.bf16.mxu0 %vm290_vm0, %v271_v45 }
  0x4c   : > { %996 = vmatmul.mubr.msk.bf16.gmra.mrb[24].mxu0 %vm290_vm0, %v272_v50 }
  0x4d   : > { %999 = vmatprep.mubr.msk.bf16.mxu0 %vm290_vm0, %v273_v51 }
  0x54   : > { %1000 = vmatmul.mubr.msk.bf16.gmra.mrb[28].mxu0 %vm290_vm0, %v274_v54 }
  0xef   : > { %v973_v58 = vpop.f32.mrb[0].mxu0 }
  0xf0   : > { %v382_v59 = vadd.f32 %v973_v58, %v1346_v57  ;;  %v373_v60 = vpop.f32.mrb[1].mxu0 }
  0xf1   : > { %v374_v61 = vadd.f32 %v1346_v57, %v373_v60  ;;  %v974_v62 = vpop.f32.mrb[2].mxu0 }
  0xf2   : > { %v385_v63 = vadd.f32 %v974_v62, %v1346_v57  ;;  %v376_v0 = vpop.f32.mrb[3].mxu0  ;;  %v502_v2 = vmax.f32 %v382_v59, 0.0 }
  0xf3   : > { %v377_v1 = vadd.f32 %v1346_v57, %v376_v0  ;;  %v500_v4 = vmax.f32 %v374_v61, 0.0 }
  0xf4   : > { %v503_v3 = vmax.f32 %v385_v63, 0.0 }
  0xf5   : > { %v501_v5 = vmax.f32 %v377_v1, 0.0 }
  0xf6   : > { %v533_v6 = vpack.c.bf16 %v503_v3, %v502_v2 }
  0xf7   : > { %v532_v7 = vpack.c.bf16 %v501_v5, %v500_v4  ;;  %v977_v8 = vpop.f32.mrb[4].mxu0 }
  0xf8   : > { %v398_v9 = vadd.f32 %v977_v8, %v1346_v57  ;;  %v389_v10 = vpop.f32.mrb[5].mxu0 }
  0xf9   : > { %v390_v11 = vadd.f32 %v1346_v57, %v389_v10  ;;  %v978_v12 = vpop.f32.mrb[6].mxu0  ;;  %1019 = vmatprep.mubr.bf16.mxu0 %v532_v7 }
  0xfa   : > { %v401_v13 = vadd.f32 %v978_v12, %v1346_v57  ;;  %v392_v14 = vpop.f32.mrb[7].mxu0  ;;  %1020 = vmatmul.mubr.bf16.vlgmr.msra.gmra.mrb[32].mxu0 %v533_v6  ;;  %v506_v16 = vmax.f32 %v398_v9, 0.0 }
  0xfb   : > { %v393_v15 = vadd.f32 %v1346_v57, %v392_v14  ;;  %v504_v18 = vmax.f32 %v390_v11, 0.0 }
  0xfc   : > { %v507_v17 = vmax.f32 %v401_v13, 0.0 }
  0xfd   : > { %v505_v19 = vmax.f32 %v393_v15, 0.0 }
  0xfe   : > { %v535_v20 = vpack.c.bf16 %v507_v17, %v506_v16 }
  0xff   : > { %v981_v21 = vpop.f32.mrb[8].mxu0  ;;  %v534_v22 = vpack.c.bf16 %v505_v19, %v504_v18 }
 0x100   : > { %v414_v23 = vadd.f32 %v981_v21, %v1346_v57  ;;  %v405_v24 = vpop.f32.mrb[9].mxu0 }
 0x101   : > { %v406_v25 = vadd.f32 %v1346_v57, %v405_v24  ;;  %v982_v26 = vpop.f32.mrb[10].mxu0  ;;  %1023 = vmatprep.mubr.bf16.mxu1 %v534_v22 }
 0x102   : > { %v417_v27 = vadd.f32 %v982_v26, %v1346_v57  ;;  %v408_v28 = vpop.f32.mrb[11].mxu0  ;;  %1024 = vmatmul.mubr.bf16.vlgmr.msra.gmra.mrb[0].mxu1 %v535_v20  ;;  %v510_v30 = vmax.f32 %v414_v23, 0.0 }
 0x103   : > { %v409_v29 = vadd.f32 %v1346_v57, %v408_v28  ;;  %v508_v32 = vmax.f32 %v406_v25, 0.0 }
 0x104   : > { %v511_v31 = vmax.f32 %v417_v27, 0.0 }
 0x105   : > { %v509_v33 = vmax.f32 %v409_v29, 0.0 }
 0x106   : > { %v537_v34 = vpack.c.bf16 %v511_v31, %v510_v30 }
 0x107   : > { %v536_v35 = vpack.c.bf16 %v509_v33, %v508_v32  ;;  %v985_v36 = vpop.f32.mrb[12].mxu0 }
 0x108   : > { %v430_v37 = vadd.f32 %v985_v36, %v1346_v57  ;;  %v421_v38 = vpop.f32.mrb[13].mxu0 }
 0x109   : > { %v422_v39 = vadd.f32 %v1346_v57, %v421_v38  ;;  %v986_v40 = vpop.f32.mrb[14].mxu0  ;;  %1027 = vmatprep.mubr.bf16.mxu1 %v536_v35 }
 0x10a   : > { %v433_v41 = vadd.f32 %v986_v40, %v1346_v57  ;;  %v424_v42 = vpop.f32.mrb[15].mxu0  ;;  %1028 = vmatmul.mubr.bf16.gmra.mrb[4].mxu1 %v537_v34  ;;  %v514_v44 = vmax.f32 %v430_v37, 0.0 }
 0x10b   : > { %v425_v43 = vadd.f32 %v1346_v57, %v424_v42  ;;  %v512_v46 = vmax.f32 %v422_v39, 0.0 }
 0x10c   : > { %v515_v45 = vmax.f32 %v433_v41, 0.0 }
 0x10d   : > { %v513_v47 = vmax.f32 %v425_v43, 0.0  ;;  %v1386_v43 = vld [vmem:[%s1510_s4] ss:$0 sm:$0xff] }
 0x10e   : > { %v539_v48 = vpack.c.bf16 %v515_v45, %v514_v44 }
 0x10f   : > { %v538_v49 = vpack.c.bf16 %v513_v47, %v512_v46  ;;  %v989_v50 = vpop.f32.mrb[16].mxu0 }
 0x110   : > { %v446_v51 = vadd.f32 %v989_v50, %v1346_v57  ;;  %v437_v52 = vpop.f32.mrb[17].mxu0 }
 0x111   : > { %v438_v53 = vadd.f32 %v1346_v57, %v437_v52  ;;  %v990_v54 = vpop.f32.mrb[18].mxu0  ;;  %1031 = vmatprep.mubr.bf16.mxu1 %v538_v49 }
 0x112   : > { %v449_v55 = vadd.f32 %v990_v54, %v1346_v57  ;;  %v440_v56 = vpop.f32.mrb[19].mxu0  ;;  %1032 = vmatmul.mubr.bf16.gmra.mrb[8].mxu1 %v539_v48  ;;  %v518_v59 = vmax.f32 %v446_v51, 0.0 }
 0x113   : > { %v441_v58 = vadd.f32 %v1346_v57, %v440_v56  ;;  %v516_v61 = vmax.f32 %v438_v53, 0.0 }
 0x114   : > { %v519_v60 = vmax.f32 %v449_v55, 0.0 }
 0x115   : > { %v517_v62 = vmax.f32 %v441_v58, 0.0 }
 0x116   : > { %v541_v63 = vpack.c.bf16 %v519_v60, %v518_v59 }
 0x117   : > { %v540_v0 = vpack.c.bf16 %v517_v62, %v516_v61  ;;  %v993_v1 = vpop.f32.mrb[20].mxu0 }
 0x118   : > { %v462_v2 = vadd.f32 %v993_v1, %v1346_v57  ;;  %v453_v3 = vpop.f32.mrb[21].mxu0 }
 0x119   : > { %v454_v4 = vadd.f32 %v1346_v57, %v453_v3  ;;  %v994_v5 = vpop.f32.mrb[22].mxu0  ;;  %1035 = vmatprep.mubr.bf16.mxu1 %v540_v0 }
 0x11a   : > { %v465_v6 = vadd.f32 %v994_v5, %v1346_v57  ;;  %v456_v7 = vpop.f32.mrb[23].mxu0  ;;  %1036 = vmatmul.mubr.bf16.gmra.mrb[12].mxu1 %v541_v63  ;;  %v522_v9 = vmax.f32 %v462_v2, 0.0 }
 0x11b   : > { %v457_v8 = vadd.f32 %v1346_v57, %v456_v7  ;;  %v520_v11 = vmax.f32 %v454_v4, 0.0 }
 0x11c   : > { %v523_v10 = vmax.f32 %v465_v6, 0.0 }
 0x11d   : > { %v521_v12 = vmax.f32 %v457_v8, 0.0 }
 0x11e   : > { %v543_v13 = vpack.c.bf16 %v523_v10, %v522_v9 }
 0x11f   : > { %v542_v14 = vpack.c.bf16 %v521_v12, %v520_v11  ;;  %v997_v15 = vpop.f32.mrb[24].mxu0 }
 0x120   : > { %v478_v16 = vadd.f32 %v997_v15, %v1346_v57  ;;  %v469_v17 = vpop.f32.mrb[25].mxu0 }
 0x121   : > { %v470_v18 = vadd.f32 %v1346_v57, %v469_v17  ;;  %v998_v19 = vpop.f32.mrb[26].mxu0  ;;  %1039 = vmatprep.mubr.bf16.mxu1 %v542_v14 }
 0x122   : > { %v481_v20 = vadd.f32 %v998_v19, %v1346_v57  ;;  %v472_v21 = vpop.f32.mrb[27].mxu0  ;;  %1040 = vmatmul.mubr.bf16.gmra.mrb[16].mxu1 %v543_v13  ;;  %v526_v23 = vmax.f32 %v478_v16, 0.0 }
 0x123   : > { %v473_v22 = vadd.f32 %v1346_v57, %v472_v21  ;;  %v524_v25 = vmax.f32 %v470_v18, 0.0 }
 0x124   : > { %v527_v24 = vmax.f32 %v481_v20, 0.0 }
 0x125   : > { %v525_v26 = vmax.f32 %v473_v22, 0.0 }
 0x126   : > { %v545_v27 = vpack.c.bf16 %v527_v24, %v526_v23 }
 0x127   : > { %v544_v28 = vpack.c.bf16 %v525_v26, %v524_v25  ;;  %v1001_v29 = vpop.f32.mrb[28].mxu0 }
 0x128   : > { %v494_v30 = vadd.f32 %v1001_v29, %v1346_v57  ;;  %v485_v31 = vpop.f32.mrb[29].mxu0 }
 0x129   : > { %v486_v32 = vadd.f32 %v1346_v57, %v485_v31  ;;  %v1002_v33 = vpop.f32.mrb[30].mxu0  ;;  %1043 = vmatprep.mubr.bf16.mxu1 %v544_v28 }
 0x12a   : > { %v497_v34 = vadd.f32 %v1002_v33, %v1346_v57  ;;  %v488_v35 = vpop.f32.mrb[31].mxu0  ;;  %1044 = vmatmul.mubr.bf16.gmra.mrb[20].mxu1 %v545_v27  ;;  %v530_v37 = vmax.f32 %v494_v30, 0.0 }
 0x12b   : > { %v489_v36 = vadd.f32 %v1346_v57, %v488_v35  ;;  %v528_v39 = vmax.f32 %v486_v32, 0.0 }
 0x12c   : > { %v531_v38 = vmax.f32 %v497_v34, 0.0 }
 0x12d   : > { %v529_v40 = vmax.f32 %v489_v36, 0.0 }
 0x12e   : > { %v547_v41 = vpack.c.bf16 %v531_v38, %v530_v37 }
 0x12f   : > { %v546_v42 = vpack.c.bf16 %v529_v40, %v528_v39 }
 0x131   : > { %1047 = vmatprep.mubr.bf16.mxu1 %v546_v42 }
 0x132   : > { %1048 = vmatmul.mubr.bf16.gmra.mrb[24].mxu1 %v547_v41 }
 0x1cd   : > { %v1021_v44 = vpop.f32.mrb[32].mxu0 }
 0x1ce   : > { %v662_v45 = vadd.f32 %v1021_v44, %v1386_v43  ;;  %v653_v57 = vpop.f32.mrb[33].mxu0 }
 0x1cf   : > { %v654_v46 = vadd.f32 %v1386_v43, %v653_v57  ;;  %v1022_v47 = vpop.f32.mrb[34].mxu0 }
 0x1d0   : > { %782 = vst [vmem:[%s1390_s23 + $0x10] sm:$0xff] %v662_v45  ;;  %v665_v48 = vadd.f32 %v1022_v47, %v1386_v43  ;;  %v656_v49 = vpop.f32.mrb[35].mxu0 }
 0x1d1   : > { %780 = vst [vmem:[%s1390_s23] sm:$0xff] %v654_v46  ;;  %v657_v50 = vadd.f32 %v1386_v43, %v656_v49 }
 0x1d2   : > { %783 = vst [vmem:[%s1390_s23 + $0x18] sm:$0xff] %v665_v48 }
 0x1d3   : > { %781 = vst [vmem:[%s1390_s23 + $0x8] sm:$0xff] %v657_v50 }
 0x1d5   : > { %v1025_v51 = vpop.f32.mrb[0].mxu1 }
 0x1d6   : > { %v678_v52 = vadd.f32 %v1025_v51, %v1386_v43  ;;  %v669_v53 = vpop.f32.mrb[1].mxu1 }
 0x1d7   : > { %v670_v54 = vadd.f32 %v1386_v43, %v669_v53  ;;  %v1026_v55 = vpop.f32.mrb[2].mxu1 }
 0x1d8   : > { %786 = vst [vmem:[%s1390_s23 + $0x30] sm:$0xff] %v678_v52  ;;  %v681_v56 = vadd.f32 %v1026_v55, %v1386_v43  ;;  %v672_v58 = vpop.f32.mrb[3].mxu1 }
 0x1d9   : > { %784 = vst [vmem:[%s1390_s23 + $0x20] sm:$0xff] %v670_v54  ;;  %v673_v59 = vadd.f32 %v1386_v43, %v672_v58 }
 0x1da   : > { %787 = vst [vmem:[%s1390_s23 + $0x38] sm:$0xff] %v681_v56 }
 0x1db   : > { %785 = vst [vmem:[%s1390_s23 + $0x28] sm:$0xff] %v673_v59 }
 0x1dd   : > { %v1029_v60 = vpop.f32.mrb[4].mxu1 }
 0x1de   : > { %v694_v61 = vadd.f32 %v1029_v60, %v1386_v43  ;;  %v685_v62 = vpop.f32.mrb[5].mxu1 }
 0x1df   : > { %v686_v63 = vadd.f32 %v1386_v43, %v685_v62  ;;  %v1030_v0 = vpop.f32.mrb[6].mxu1 }
 0x1e0   : > { %790 = vst [vmem:[%s1390_s23 + $0x50] sm:$0xff] %v694_v61  ;;  %v697_v1 = vadd.f32 %v1030_v0, %v1386_v43  ;;  %v688_v2 = vpop.f32.mrb[7].mxu1 }
 0x1e1   : > { %788 = vst [vmem:[%s1390_s23 + $0x40] sm:$0xff] %v686_v63  ;;  %v689_v3 = vadd.f32 %v1386_v43, %v688_v2 }
 0x1e2   : > { %791 = vst [vmem:[%s1390_s23 + $0x58] sm:$0xff] %v697_v1 }
 0x1e3   : > { %789 = vst [vmem:[%s1390_s23 + $0x48] sm:$0xff] %v689_v3 }
 0x1e5   : > { %v1033_v4 = vpop.f32.mrb[8].mxu1 }
 0x1e6   : > { %v710_v5 = vadd.f32 %v1033_v4, %v1386_v43  ;;  %v701_v6 = vpop.f32.mrb[9].mxu1 }
 0x1e7   : > { %v702_v7 = vadd.f32 %v1386_v43, %v701_v6  ;;  %v1034_v8 = vpop.f32.mrb[10].mxu1 }
 0x1e8   : > { %794 = vst [vmem:[%s1390_s23 + $0x70] sm:$0xff] %v710_v5  ;;  %v713_v9 = vadd.f32 %v1034_v8, %v1386_v43  ;;  %v704_v10 = vpop.f32.mrb[11].mxu1 }
 0x1e9   : > { %792 = vst [vmem:[%s1390_s23 + $0x60] sm:$0xff] %v702_v7  ;;  %v705_v11 = vadd.f32 %v1386_v43, %v704_v10 }
 0x1ea   : > { %795 = vst [vmem:[%s1390_s23 + $0x78] sm:$0xff] %v713_v9 }
 0x1eb   : > { %793 = vst [vmem:[%s1390_s23 + $0x68] sm:$0xff] %v705_v11 }
 0x1ed   : > { %v1037_v12 = vpop.f32.mrb[12].mxu1 }
 0x1ee   : > { %v726_v13 = vadd.f32 %v1037_v12, %v1386_v43  ;;  %v717_v14 = vpop.f32.mrb[13].mxu1 }
 0x1ef   : > { %v718_v15 = vadd.f32 %v1386_v43, %v717_v14  ;;  %v1038_v16 = vpop.f32.mrb[14].mxu1 }
 0x1f0   : > { %798 = vst [vmem:[%s1390_s23 + $0x90] sm:$0xff] %v726_v13  ;;  %v729_v17 = vadd.f32 %v1038_v16, %v1386_v43  ;;  %v720_v18 = vpop.f32.mrb[15].mxu1 }
 0x1f1   : > { %796 = vst [vmem:[%s1390_s23 + $0x80] sm:$0xff] %v718_v15  ;;  %v721_v19 = vadd.f32 %v1386_v43, %v720_v18 }
 0x1f2   : > { %799 = vst [vmem:[%s1390_s23 + $0x98] sm:$0xff] %v729_v17 }
 0x1f3   : > { %797 = vst [vmem:[%s1390_s23 + $0x88] sm:$0xff] %v721_v19 }
 0x1f5   : > { %v1041_v20 = vpop.f32.mrb[16].mxu1 }
 0x1f6   : > { %v742_v21 = vadd.f32 %v1041_v20, %v1386_v43  ;;  %v733_v22 = vpop.f32.mrb[17].mxu1 }
 0x1f7   : > { %v734_v23 = vadd.f32 %v1386_v43, %v733_v22  ;;  %v1042_v24 = vpop.f32.mrb[18].mxu1 }
 0x1f8   : > { %802 = vst [vmem:[%s1390_s23 + $0xb0] sm:$0xff] %v742_v21  ;;  %v745_v25 = vadd.f32 %v1042_v24, %v1386_v43  ;;  %v736_v26 = vpop.f32.mrb[19].mxu1 }
 0x1f9   : > { %800 = vst [vmem:[%s1390_s23 + $0xa0] sm:$0xff] %v734_v23  ;;  %v737_v27 = vadd.f32 %v1386_v43, %v736_v26 }
 0x1fa   : > { %803 = vst [vmem:[%s1390_s23 + $0xb8] sm:$0xff] %v745_v25 }
 0x1fb   : > { %801 = vst [vmem:[%s1390_s23 + $0xa8] sm:$0xff] %v737_v27 }
 0x1fd   : > { %v1045_v28 = vpop.f32.mrb[20].mxu1 }
 0x1fe   : > { %v758_v29 = vadd.f32 %v1045_v28, %v1386_v43  ;;  %v749_v30 = vpop.f32.mrb[21].mxu1 }
 0x1ff   : > { %v750_v31 = vadd.f32 %v1386_v43, %v749_v30  ;;  %v1046_v32 = vpop.f32.mrb[22].mxu1 }
 0x200   : > { %806 = vst [vmem:[%s1390_s23 + $0xd0] sm:$0xff] %v758_v29  ;;  %v761_v33 = vadd.f32 %v1046_v32, %v1386_v43  ;;  %v752_v34 = vpop.f32.mrb[23].mxu1 }
 0x201   : > { %804 = vst [vmem:[%s1390_s23 + $0xc0] sm:$0xff] %v750_v31  ;;  %v753_v35 = vadd.f32 %v1386_v43, %v752_v34 }
 0x202   : > { %807 = vst [vmem:[%s1390_s23 + $0xd8] sm:$0xff] %v761_v33 }
 0x203   : > { %805 = vst [vmem:[%s1390_s23 + $0xc8] sm:$0xff] %v753_v35 }
 0x205   : > { %v1049_v36 = vpop.f32.mrb[24].mxu1 }
 0x206   : > { %v774_v37 = vadd.f32 %v1049_v36, %v1386_v43  ;;  %v765_v38 = vpop.f32.mrb[25].mxu1 }
 0x207   : > { %v766_v39 = vadd.f32 %v1386_v43, %v765_v38  ;;  %v1050_v40 = vpop.f32.mrb[26].mxu1 }
 0x208   : > { %810 = vst [vmem:[%s1390_s23 + $0xf0] sm:$0xff] %v774_v37  ;;  %v777_v41 = vadd.f32 %v1050_v40, %v1386_v43  ;;  %v768_v42 = vpop.f32.mrb[27].mxu1 }
 0x209   : > { %808 = vst [vmem:[%s1390_s23 + $0xe0] sm:$0xff] %v766_v39  ;;  %v769_v44 = vadd.f32 %v1386_v43, %v768_v42 }
 0x20a   : > { %811 = vst [vmem:[%s1390_s23 + $0xf8] sm:$0xff] %v777_v41 }
 0x20b   : > { %809 = vst [vmem:[%s1390_s23 + $0xe8] sm:$0xff] %v769_v44 }
 0x20c   : > { %1130 = shalt.err (!%p1127_p3)
}
 0x20d   : > { %s1131_s12 = scalar_lea.hbm %s1455_s7, 4096  ;;  %s1135_s15 = scalar_lea.hbm %s1511_s5, 8192 }
 0x20e   : > { %p1132_p4 = scmp.ne.s32.totalorder %s1455_s7, %s1131_s12  ;;  %p1136_p9 = scmp.lt.u32.totalorder %s1455_s7, %s1511_s5 }
 0x20f   : > { %p1137_p10 = scmp.lt.u32.totalorder %s1135_s15, %s1131_s12  ;;  %p1139_p12 = scmp.lt.u32.totalorder %s1131_s12, %s1455_s7 }
 0x210   : > { %p1133_p7 = pnand %p1132_p4, %p1252_p5 }
 0x211   : > { %p1138_p11 = por %p1137_p10, %p1136_p9 }
 0x212   : > { %p1134_p8 = pneg %p1133_p7 }
 0x213   : > { %p1140_p13 = por %p1139_p12, %p1138_p11 }
 0x215   : > { %p1141_p0 = pnand %p1140_p13, %p1134_p8 }
 0x217   : > { %1144 = shalt.err (!%p1141_p0)
}
 0x218   : > { %s1182_s23 = smov 128   ;;  %s1183_s25 = smov 8  }
 0x219   : > { %1067 = dma.vmem_to_hbm [thread:$0]  (%p1252_p5), %s1457_s26, 4096, %s1455_s7, %s1465_s22, %s1182_s23, %s1182_s23, %s1183_s25  }
 0x21a PF: > { %p1073_p1 = scmp.ge.s32.totalorder %s1179_s21, 2  ;;  %s841_s30 = sand.u32 1, %s1167_s18  }
 0x21b   : > { %s842_s6 = scalar_lea.sflag [#allocation3], %s841_s30 }
 0x21c   : > { %p1070_p2 = pnand %p1073_p1, %p1256_p6 }
 0x21e   : > { %1162 = dma.done.wait (!%p1070_p2), %s842_s6, 4096  }
 0x21f   : > { %1164 = vsyncadd (!%p1070_p2), %s842_s6, 4294963200  ;;  %p15_p3 = scmp.ge.s32.totalorder %s1239_s24, 4   ;;  %s1514_s18 = smov %s1171_s19 }
 0x220   : > { %s1515_s19 = smov %s1175_s20  ;;  %s1516_s20 = smov %s1250_s27 }
 0x221   : > { %s1517_s21 = smov %s1239_s24  ;;  %17 = sbr.rel (!%p15_p3) target bundleno = 3 (0x3), region = 75 }
 0x228   :  { %847 = vsyncpa [#allocation3], 1 }
 0x229   :  { %849 = vsyncpa [#allocation3 + $0x1], 1 }

</bundles_post_ra>
